<compile_context>
chip_gen: v6e
topology: v6e:2x2x1
jax: 0.10.0
libtpu: 0.0.40
codegen_flags: <defaults>
</compile_context>

<pallas_src>
import functools

import jax
import jax.numpy as jnp
from jax.experimental import pallas as pl
from jax.experimental.pallas import tpu as pltpu

BN_EPS = 1e-5
VAR_EPS = 1e-5
LANE = 128


def _round_up(x, m):
    return (x + m - 1) // m * m


def _vae_encoder_kernel(x_ref, wblob_ref, pblob_ref, eps_ref, out_ref,
                        *, f_pad, h1p, h2p):
    inv_n = 1.0 / x_ref.shape[0]

    # --- static views into the packed parameter blobs -----------------------
    # bf16 blob rows: [0, f_pad) -> w1 [f_pad, h1p] ; [f_pad, f_pad+h1p) -> w2.
    w1 = wblob_ref[0:f_pad, 0:h1p]
    w2 = wblob_ref[f_pad:f_pad + h1p, 0:h2p]
    # f32 blob rows: [0, h2p) -> fused lane-aligned mu|logvar head weight,
    # then 8-row slots for (gamma1, beta1), (gamma2, beta2), head bias.
    wh = pblob_ref[0:h2p, :]                                  # [h2p, 2*LANE]
    gamma1 = pblob_ref[h2p + 0:h2p + 1, 0:h1p]
    beta1 = pblob_ref[h2p + 1:h2p + 2, 0:h1p]
    gamma2 = pblob_ref[h2p + 8:h2p + 9, 0:h2p]
    beta2 = pblob_ref[h2p + 9:h2p + 10, 0:h2p]
    bh = pblob_ref[h2p + 16:h2p + 17, :]                      # [1, 2*LANE]

    # --- encoder blocks: Linear (bias folded into BN) -> fused BN -> ReLU ---
    h_bf16 = x_ref[...]                                       # bf16 [N, f_pad]
    h_f32 = None
    for w, gamma, beta in ((w1, gamma1, beta1), (w2, gamma2, beta2)):
        y = jnp.dot(h_bf16, w, preferred_element_type=jnp.float32)
        # single-pass batch stats (train-mode BN, biased variance)
        mean = jnp.sum(y, axis=0, keepdims=True) * inv_n
        msq = jnp.sum(y * y, axis=0, keepdims=True) * inv_n
        var_b = jnp.maximum(msq - mean * mean, 0.0)
        scale = gamma * jax.lax.rsqrt(var_b + BN_EPS)         # [1, H]
        shift = beta - mean * scale                           # [1, H]
        h_f32 = jnp.maximum(y * scale + shift, 0.0)           # fused BN + ReLU
        h_bf16 = h_f32.astype(jnp.bfloat16)

    # --- fused mu | log-var head (f32 operands: tiny, exp-sensitive) --------
    head = jnp.dot(h_f32, wh, preferred_element_type=jnp.float32) + bh
    mu = head[:, 0:LANE]                                      # lane-aligned split
    var = jnp.exp(head[:, LANE:2 * LANE]) + VAR_EPS

    # reparameterize: z = mu + sqrt(var) * eps  (eps zero in padded lanes)
    z = mu + jnp.sqrt(var) * eps_ref[...]

    # three 128-lane-aligned full-width stores (no epilogue shuffle work)
    out_ref[:, 0:LANE] = z
    out_ref[:, LANE:2 * LANE] = mu
    out_ref[:, 2 * LANE:3 * LANE] = var


def vae_encoder_forward(x, params, eps):
    """Whole VAEEncoder forward in one Pallas kernel.

    x:      [N, n_features] float32
    params: {"wblob": bf16 packed weights, "pblob": f32 packed params}
    eps:    [N, latent_dim] float32 standard-normal noise
    returns (z, mu, var), each [N, latent_dim] float32
    """
    n, f = x.shape
    latent_dim = eps.shape[1]
    f_pad = _round_up(f, LANE)
    h1p = params["wblob"].shape[0] - f_pad
    h2p = params["pblob"].shape[0] - 24

    # Pad x (bf16) and eps (f32) to lane-aligned widths; padded lanes are 0.
    x_pad = jnp.zeros((n, f_pad), jnp.bfloat16).at[:, :f].set(
        x.astype(jnp.bfloat16))
    eps_pad = jnp.zeros((n, LANE), jnp.float32).at[:, :latent_dim].set(eps)

    inputs = (x_pad, params["wblob"], params["pblob"], eps_pad)
    vmem = pl.BlockSpec(memory_space=pltpu.MemorySpace.VMEM)

    out = pl.pallas_call(
        functools.partial(_vae_encoder_kernel, f_pad=f_pad, h1p=h1p, h2p=h2p),
        out_shape=jax.ShapeDtypeStruct((n, 3 * LANE), jnp.float32),
        in_specs=[vmem] * len(inputs),
        out_specs=vmem,
        compiler_params=pltpu.CompilerParams(vmem_limit_bytes=32 << 20),
    )(*inputs)

    z = out[:, 0:latent_dim]
    mu = out[:, LANE:LANE + latent_dim]
    var = out[:, 2 * LANE:2 * LANE + latent_dim]
    return z, mu, var


def init_params(key, n_features, layer_dims, latent_dim):
    """Deterministic synthetic parameters, packed & padded for the kernel.

    wblob (bf16): rows [0, f_pad) hold w1 [n_features, h1] (PyTorch [out,in]
    transposed), rows [f_pad, f_pad+h1p) hold w2; zero-padded elsewhere.
    pblob (f32): rows [0, h2p) hold the fused head weight with mu in lanes
    [0,128) and log-var in lanes [128,256); then 8-row slots for
    (gamma1,beta1), (gamma2,beta2) and the lane-aligned head bias.
    Pre-BN Linear biases are omitted (cancelled exactly by BN); BN defaults
    gamma=1, beta=0; padded columns keep gamma=beta=0 so they stay zero.
    """
    f, h1, h2 = n_features, layer_dims[0], layer_dims[1]
    f_pad = _round_up(f, LANE)
    h1p, h2p = _round_up(h1, LANE), _round_up(h2, LANE)
    w_width = max(h1p, h2p)
    p_width = max(h1p, h2p, 2 * LANE)
    keys = jax.random.split(key, 8)

    # PyTorch nn.Linear layout [out, in] -> transpose to [in, out].
    w1 = jax.random.normal(keys[0], (h1, f), jnp.float32).T * 0.05
    w2 = jax.random.normal(keys[2], (h2, h1), jnp.float32).T * 0.05
    wmu = jax.random.normal(keys[4], (latent_dim, h2), jnp.float32).T * 0.05
    wvar = jax.random.normal(keys[6], (latent_dim, h2), jnp.float32).T * 0.05
    bmu = jax.random.normal(keys[5], (latent_dim,), jnp.float32) * 0.05
    bvar = jax.random.normal(keys[7], (latent_dim,), jnp.float32) * 0.05

    wblob = jnp.zeros((f_pad + h1p, w_width), jnp.float32)
    wblob = wblob.at[:f, :h1].set(w1)
    wblob = wblob.at[f_pad:f_pad + h1, :h2].set(w2)
    wblob = wblob.astype(jnp.bfloat16)

    pblob = jnp.zeros((h2p + 24, p_width), jnp.float32)
    pblob = pblob.at[:h2, 0:latent_dim].set(wmu)               # mu head
    pblob = pblob.at[:h2, LANE:LANE + latent_dim].set(wvar)    # log-var head
    pblob = pblob.at[h2p + 0, :h1].set(1.0)                    # gamma1 (beta1=0)
    pblob = pblob.at[h2p + 8, :h2].set(1.0)                    # gamma2 (beta2=0)
    pblob = pblob.at[h2p + 16, 0:latent_dim].set(bmu)          # head bias (mu)
    pblob = pblob.at[h2p + 16, LANE:LANE + latent_dim].set(bvar)

    return {"wblob": wblob, "pblob": pblob}


def _reference_forward(x, params, eps, n_features, layer_dims, latent_dim):
    """Pure-JAX f32 reference (PyTorch semantics, BN train mode)."""
    f, h1, h2 = n_features, layer_dims[0], layer_dims[1]
    f_pad = _round_up(f, LANE)
    h1p, h2p = _round_up(h1, LANE), _round_up(h2, LANE)
    wblob = params["wblob"].astype(jnp.float32)
    pblob = params["pblob"]
    w1 = wblob[:f, :h1]
    w2 = wblob[f_pad:f_pad + h1, :h2]
    wmu = pblob[:h2, 0:latent_dim]
    wvar = pblob[:h2, LANE:LANE + latent_dim]
    bmu = pblob[h2p + 16, 0:latent_dim]
    bvar = pblob[h2p + 16, LANE:LANE + latent_dim]

    h = x
    for w in (w1, w2):
        y = h @ w
        mean = jnp.mean(y, axis=0, keepdims=True)
        var_b = jnp.mean((y - mean) ** 2, axis=0, keepdims=True)
        y = (y - mean) * jax.lax.rsqrt(var_b + BN_EPS)   # gamma=1, beta=0
        h = jnp.maximum(y, 0.0)
    mu = h @ wmu + bmu
    var = jnp.exp(h @ wvar + bvar) + VAR_EPS
    z = mu + jnp.sqrt(var) * eps
    return z, mu, var


if __name__ == "__main__":
    # Small shapes consistent with the module: x is [batch, n_features].
    batch = 8
    n_features = 32
    layer_dims = [64, 32]   # hidden layers of the encoder
    latent_dim = 16

    key = jax.random.PRNGKey(0)
    k_x, k_p, k_eps = jax.random.split(key, 3)

    x = jax.random.normal(k_x, (batch, n_features), jnp.float32)
    params = init_params(k_p, n_features, layer_dims, latent_dim)
    eps = jax.random.normal(k_eps, (batch, latent_dim), jnp.float32)

    z, mu, var = jax.jit(vae_encoder_forward)(x, params, eps)
    jax.block_until_ready((z, mu, var))

    assert z.shape == (batch, latent_dim)
    assert mu.shape == (batch, latent_dim)
    assert var.shape == (batch, latent_dim)
    assert bool(jnp.all(var > 0.0))
    assert bool(jnp.all(jnp.isfinite(z)))

    # Cross-check against a pure-JAX f32 reference (generous tolerance: the
    # encoder-block matmuls run in bf16 on the MXU).
    z_r, mu_r, var_r = _reference_forward(x, params, eps,
                                          n_features, layer_dims, latent_dim)
    assert bool(jnp.allclose(mu, mu_r, rtol=1e-1, atol=5e-2))
    assert bool(jnp.allclose(var, var_r, rtol=1e-1, atol=5e-2))
    assert bool(jnp.allclose(z, z_r, rtol=1e-1, atol=5e-2))

    print("KERNEL_OK")
</pallas_src>

<mosaic_0001>
module attributes {stable_mosaic.version = 11 : i64} {
  func.func @_vae_encoder_kernel(%arg0: memref<8x128xbf16, #tpu.memory_space<vmem>>, %arg1: memref<256x128xbf16, #tpu.memory_space<vmem>>, %arg2: memref<152x256xf32, #tpu.memory_space<vmem>>, %arg3: memref<8x128xf32, #tpu.memory_space<vmem>>, %arg4: memref<8x384xf32, #tpu.memory_space<vmem>>) attributes {dimension_semantics = [], scalar_prefetch = 0 : i64, scratch_operands = 0 : i64, tpu.core_type = #tpu.core_type<tc>} {
    %c0 = arith.constant 0 : index
    %c0_0 = arith.constant 0 : index
    %0 = vector.load %arg1[%c0, %c0_0] : memref<256x128xbf16, #tpu.memory_space<vmem>>, vector<128x128xbf16>
    %c128 = arith.constant 128 : index
    %c0_1 = arith.constant 0 : index
    %1 = vector.load %arg1[%c128, %c0_1] : memref<256x128xbf16, #tpu.memory_space<vmem>>, vector<128x128xbf16>
    %c0_2 = arith.constant 0 : index
    %c0_3 = arith.constant 0 : index
    %2 = vector.load %arg2[%c0_2, %c0_3] : memref<152x256xf32, #tpu.memory_space<vmem>>, vector<128x256xf32>
    %c128_4 = arith.constant 128 : index
    %c0_5 = arith.constant 0 : index
    %3 = vector.load %arg2[%c128_4, %c0_5] : memref<152x256xf32, #tpu.memory_space<vmem>>, vector<1x128xf32>
    %c129 = arith.constant 129 : index
    %c0_6 = arith.constant 0 : index
    %4 = vector.load %arg2[%c129, %c0_6] : memref<152x256xf32, #tpu.memory_space<vmem>>, vector<1x128xf32>
    %c136 = arith.constant 136 : index
    %c0_7 = arith.constant 0 : index
    %5 = vector.load %arg2[%c136, %c0_7] : memref<152x256xf32, #tpu.memory_space<vmem>>, vector<1x128xf32>
    %c137 = arith.constant 137 : index
    %c0_8 = arith.constant 0 : index
    %6 = vector.load %arg2[%c137, %c0_8] : memref<152x256xf32, #tpu.memory_space<vmem>>, vector<1x128xf32>
    %c144 = arith.constant 144 : index
    %c0_9 = arith.constant 0 : index
    %7 = vector.load %arg2[%c144, %c0_9] : memref<152x256xf32, #tpu.memory_space<vmem>>, vector<1x256xf32>
    %c0_10 = arith.constant 0 : index
    %c0_11 = arith.constant 0 : index
    %8 = vector.load %arg0[%c0_10, %c0_11] : memref<8x128xbf16, #tpu.memory_space<vmem>>, vector<8x128xbf16>
    %cst = arith.constant dense<0.000000e+00> : vector<8x128xf32>
    %9 = tpu.matmul %8, %0, %cst {dimension_numbers = #tpu.dot_dimension_numbers<[1], [0], [0], [1], [0, 0, 1, 1], [], []>} : vector<8x128xbf16>, vector<128x128xbf16>, vector<8x128xf32> -> vector<8x128xf32>
    %cst_12 = arith.constant dense<0.000000e+00> : vector<128xf32>
    %10 = vector.multi_reduction <add>, %9, %cst_12 [0] : vector<8x128xf32> to vector<128xf32>
    %11 = vector.shape_cast %10 : vector<128xf32> to vector<1x128xf32>
    %cst_13 = arith.constant 1.250000e-01 : f32
    %12 = vector.broadcast %cst_13 : f32 to vector<1x128xf32>
    %13 = arith.mulf %11, %12 : vector<1x128xf32>
    %14 = arith.mulf %9, %9 : vector<8x128xf32>
    %cst_14 = arith.constant dense<0.000000e+00> : vector<128xf32>
    %15 = vector.multi_reduction <add>, %14, %cst_14 [0] : vector<8x128xf32> to vector<128xf32>
    %16 = vector.shape_cast %15 : vector<128xf32> to vector<1x128xf32>
    %cst_15 = arith.constant 1.250000e-01 : f32
    %17 = vector.broadcast %cst_15 : f32 to vector<1x128xf32>
    %18 = arith.mulf %16, %17 : vector<1x128xf32>
    %19 = arith.mulf %13, %13 : vector<1x128xf32>
    %20 = arith.subf %18, %19 : vector<1x128xf32>
    %cst_16 = arith.constant 0.000000e+00 : f32
    %21 = vector.broadcast %cst_16 : f32 to vector<1x128xf32>
    %22 = arith.maximumf %20, %21 : vector<1x128xf32>
    %cst_17 = arith.constant 9.99999974E-6 : f32
    %23 = vector.broadcast %cst_17 : f32 to vector<1x128xf32>
    %24 = arith.addf %22, %23 : vector<1x128xf32>
    %25 = math.rsqrt %24 : vector<1x128xf32>
    %26 = arith.mulf %3, %25 : vector<1x128xf32>
    %27 = arith.mulf %13, %26 : vector<1x128xf32>
    %28 = arith.subf %4, %27 : vector<1x128xf32>
    %29 = vector.broadcast %26 : vector<1x128xf32> to vector<8x128xf32>
    %30 = arith.mulf %9, %29 : vector<8x128xf32>
    %31 = vector.broadcast %28 : vector<1x128xf32> to vector<8x128xf32>
    %32 = arith.addf %30, %31 : vector<8x128xf32>
    %cst_18 = arith.constant 0.000000e+00 : f32
    %33 = vector.broadcast %cst_18 : f32 to vector<8x128xf32>
    %34 = arith.maximumf %32, %33 : vector<8x128xf32>
    %35 = arith.truncf %34 : vector<8x128xf32> to vector<8x128xbf16>
    %cst_19 = arith.constant dense<0.000000e+00> : vector<8x128xf32>
    %36 = tpu.matmul %35, %1, %cst_19 {dimension_numbers = #tpu.dot_dimension_numbers<[1], [0], [0], [1], [0, 0, 1, 1], [], []>} : vector<8x128xbf16>, vector<128x128xbf16>, vector<8x128xf32> -> vector<8x128xf32>
    %cst_20 = arith.constant dense<0.000000e+00> : vector<128xf32>
    %37 = vector.multi_reduction <add>, %36, %cst_20 [0] : vector<8x128xf32> to vector<128xf32>
    %38 = vector.shape_cast %37 : vector<128xf32> to vector<1x128xf32>
    %cst_21 = arith.constant 1.250000e-01 : f32
    %39 = vector.broadcast %cst_21 : f32 to vector<1x128xf32>
    %40 = arith.mulf %38, %39 : vector<1x128xf32>
    %41 = arith.mulf %36, %36 : vector<8x128xf32>
    %cst_22 = arith.constant dense<0.000000e+00> : vector<128xf32>
    %42 = vector.multi_reduction <add>, %41, %cst_22 [0] : vector<8x128xf32> to vector<128xf32>
    %43 = vector.shape_cast %42 : vector<128xf32> to vector<1x128xf32>
    %cst_23 = arith.constant 1.250000e-01 : f32
    %44 = vector.broadcast %cst_23 : f32 to vector<1x128xf32>
    %45 = arith.mulf %43, %44 : vector<1x128xf32>
    %46 = arith.mulf %40, %40 : vector<1x128xf32>
    %47 = arith.subf %45, %46 : vector<1x128xf32>
    %cst_24 = arith.constant 0.000000e+00 : f32
    %48 = vector.broadcast %cst_24 : f32 to vector<1x128xf32>
    %49 = arith.maximumf %47, %48 : vector<1x128xf32>
    %cst_25 = arith.constant 9.99999974E-6 : f32
    %50 = vector.broadcast %cst_25 : f32 to vector<1x128xf32>
    %51 = arith.addf %49, %50 : vector<1x128xf32>
    %52 = math.rsqrt %51 : vector<1x128xf32>
    %53 = arith.mulf %5, %52 : vector<1x128xf32>
    %54 = arith.mulf %40, %53 : vector<1x128xf32>
    %55 = arith.subf %6, %54 : vector<1x128xf32>
    %56 = vector.broadcast %53 : vector<1x128xf32> to vector<8x128xf32>
    %57 = arith.mulf %36, %56 : vector<8x128xf32>
    %58 = vector.broadcast %55 : vector<1x128xf32> to vector<8x128xf32>
    %59 = arith.addf %57, %58 : vector<8x128xf32>
    %cst_26 = arith.constant 0.000000e+00 : f32
    %60 = vector.broadcast %cst_26 : f32 to vector<8x128xf32>
    %61 = arith.maximumf %59, %60 : vector<8x128xf32>
    %cst_27 = arith.constant dense<0.000000e+00> : vector<8x256xf32>
    %62 = tpu.matmul %61, %2, %cst_27 {dimension_numbers = #tpu.dot_dimension_numbers<[1], [0], [0], [1], [0, 0, 1, 1], [], []>} : vector<8x128xf32>, vector<128x256xf32>, vector<8x256xf32> -> vector<8x256xf32>
    %63 = vector.broadcast %7 : vector<1x256xf32> to vector<8x256xf32>
    %64 = arith.addf %62, %63 : vector<8x256xf32>
    %65 = vector.extract_strided_slice %64 {offsets = [0, 0], sizes = [8, 128], strides = [1, 1]} : vector<8x256xf32> to vector<8x128xf32>
    %66 = vector.extract_strided_slice %64 {offsets = [0, 128], sizes = [8, 128], strides = [1, 1]} : vector<8x256xf32> to vector<8x128xf32>
    %67 = math.exp %66 : vector<8x128xf32>
    %cst_28 = arith.constant 9.99999974E-6 : f32
    %68 = vector.broadcast %cst_28 : f32 to vector<8x128xf32>
    %69 = arith.addf %67, %68 : vector<8x128xf32>
    %70 = math.sqrt %69 : vector<8x128xf32>
    %c0_29 = arith.constant 0 : index
    %c0_30 = arith.constant 0 : index
    %71 = vector.load %arg3[%c0_29, %c0_30] : memref<8x128xf32, #tpu.memory_space<vmem>>, vector<8x128xf32>
    %72 = arith.mulf %70, %71 : vector<8x128xf32>
    %73 = arith.addf %65, %72 : vector<8x128xf32>
    %c0_31 = arith.constant 0 : index
    %c0_32 = arith.constant 0 : index
    %74 = vector.load %arg4[%c0_31, %c0_32] : memref<8x384xf32, #tpu.memory_space<vmem>>, vector<8x128xf32>
    tpu.vector_store %arg4[%c0_31, %c0_32], %73 {strides = array<i32>} : memref<8x384xf32, #tpu.memory_space<vmem>>, vector<8x128xf32>,
    %c0_33 = arith.constant 0 : index
    %c128_34 = arith.constant 128 : index
    %75 = vector.load %arg4[%c0_33, %c128_34] : memref<8x384xf32, #tpu.memory_space<vmem>>, vector<8x128xf32>
    tpu.vector_store %arg4[%c0_33, %c128_34], %65 {strides = array<i32>} : memref<8x384xf32, #tpu.memory_space<vmem>>, vector<8x128xf32>,
    %c0_35 = arith.constant 0 : index
    %c256 = arith.constant 256 : index
    %76 = vector.load %arg4[%c0_35, %c256] : memref<8x384xf32, #tpu.memory_space<vmem>>, vector<8x128xf32>
    tpu.vector_store %arg4[%c0_35, %c256], %69 {strides = array<i32>} : memref<8x384xf32, #tpu.memory_space<vmem>>, vector<8x128xf32>,
    return
  }
}

</mosaic_0001>

<bundles_post_ra>
// kernel: vae_encoder_forward.1
= control target key start
LH: loop header
LB: loop body
LE: loop exit
PB: predicated region body
PF: predicated region fallthrough
CT: control target
= control target key end

     0   :  { %9 = vsyncpa [#allocation3], 0  ;;  %s654_s0 = inlined_call_operand.vmem [shape: bf16[8,128], index: 0, kind: input, shape index: {}]   ;;  %s655_s1 = inlined_call_operand.hbm [shape: bf16[256,128], index: 1, kind: input, shape index: {}]   ;;  %s656_s2 = inlined_call_operand.hbm [shape: f32[152,256], index: 2, kind: input, shape index: {}]   ;;  %s657_s3 = inlined_call_operand.vmem [shape: f32[8,128], index: 3, kind: input, shape index: {}]   ;;  %s658_s4 = inlined_call_operand.vmem [shape: f32[8,384], index: 4, kind: output, shape index: {}]  }
   0x1   :  { %10 = vsyncpa [#allocation5], 0  ;;  %s600_s15 = smov [#allocation2]  }
   0x2   :  { %s18_s16 = sshll.u32 %s600_s15, 4  ;;  %s19_s16 = int_to_ptr.vmem [resolvable:$true] %s18_s16 }
   0x3   :  { %s564_s17 = scalar_lea.vmem %s19_s16, 2048  ;;  %p569_p1 = scmp.lt.s32.totalorder %s19_s16, %s19_s16 }
   0x4   :  { %p565_p0 = scmp.ne.s32.totalorder %s19_s16, %s564_s17  ;;  %p570_p2 = scmp.lt.s32.totalorder %s564_s17, %s564_s17 }
   0x6   :  { %p571_p3 = por %p570_p2, %p569_p1 }
   0x8   :  { %p572_p4 = pnand %p571_p3, %p565_p0 }
   0xa   :  { %575 = shalt.err (!%p572_p4)
}
   0xb   :  { %s601_s18 = smov 64   ;;  %s602_s19 = smov 4  }
   0xc   :  { %24 = dma.hbm_to_vmem [thread:$0]  %s655_s1, 2048, %s19_s16, [#allocation3], %s601_s18, %s601_s18, %s602_s19  }
   0xd   :  { %s603_s22 = smov [#allocation4]  }
   0xe   :  { %s30_s23 = sshll.u32 %s603_s22, 4  ;;  %s31_s23 = int_to_ptr.vmem [resolvable:$true] %s30_s23 }
   0xf   :  { %s584_s24 = scalar_lea.vmem %s31_s23, 4864  ;;  %p589_p6 = scmp.lt.s32.totalorder %s31_s23, %s31_s23 }
  0x10   :  { %p585_p5 = scmp.ne.s32.totalorder %s31_s23, %s584_s24  ;;  %p590_p7 = scmp.lt.s32.totalorder %s584_s24, %s584_s24 }
  0x12   :  { %p591_p8 = por %p590_p7, %p589_p6 }
  0x14   :  { %p592_p9 = pnand %p591_p8, %p585_p5 }
  0x16   :  { %595 = shalt.err (!%p592_p9)
}
  0x17   :  { %s604_s25 = smov 256   ;;  %s605_s26 = smov 16  }
  0x18   :  { %36 = dma.hbm_to_vmem [thread:$0]  %s656_s2, 4864, %s31_s23, [#allocation5], %s604_s25, %s604_s25, %s605_s26  }
  0x19   :  { %596 = dma.done.wait [#allocation3], 2048  }
  0x1a   :  { %597 = vsyncadd [#allocation3], 4294965248 }
  0x1b   :  { %598 = dma.done.wait [#allocation5], 4864  }
  0x1c   :  { %599 = vsyncadd [#allocation5], 4294962432  ;;  %v606_v0 = vmov 0.0   ;;  %vm607_vm0 = vmmov 0   ;;  %v532_v1 = vld [vmem:[#allocation2 + $0x38] sm:$0xff]   ;;  %v533_v2 = vld [vmem:[#allocation2 + $0x30] sm:$0xff]  }
  0x1d   :  { %484 = vmatprep.subr.bf16.mxu0 %v606_v0  ;;  %500 = vmatprep.mubr.msk.bf16.mxu0 %vm607_vm0, %v606_v0  ;;  %v534_v3 = vld [vmem:[#allocation2 + $0x28] sm:$0xff]   ;;  %v535_v4 = vld [vmem:[#allocation2 + $0x20] sm:$0xff]   ;;  %v536_v5 = vld [vmem:[#allocation2 + $0x18] sm:$0xff]  }
  0x1e   :  { %504 = vmatprep.subr.bf16.mxu1 %v606_v0  ;;  %520 = vmatprep.mubr.msk.bf16.mxu1 %vm607_vm0, %v606_v0  ;;  %v537_v6 = vld [vmem:[#allocation2 + $0x10] sm:$0xff]   ;;  %v538_v7 = vld [vmem:[#allocation2 + $0x8] sm:$0xff]   ;;  %v539_v8 = vld [vmem:[#allocation2] sm:$0xff]  }
  0x1f   :  { %485 = vmatpush3.bf16.msra.mxu0 %v532_v1  ;;  %v116_v9 = vld [vmem:[%s654_s0] sm:$0xf]  ;;  %v540_v10 = vld [vmem:[#allocation2 + $0x78] sm:$0xff]   ;;  %v541_v11 = vld [vmem:[#allocation2 + $0x70] sm:$0xff]  }
  0x20   :  { %486 = vmatprep.subr.bf16.mxu0 %v606_v0  ;;  %505 = vmatpush3.bf16.msra.mxu1 %v540_v10  ;;  %v542_v12 = vld [vmem:[#allocation2 + $0x68] sm:$0xff]   ;;  %v543_v13 = vld [vmem:[#allocation2 + $0x60] sm:$0xff]   ;;  %v544_v14 = vld [vmem:[#allocation2 + $0x58] sm:$0xff]  }
  0x21   :  { %506 = vmatprep.subr.bf16.mxu1 %v606_v0  ;;  %v545_v15 = vld [vmem:[#allocation2 + $0x50] sm:$0xff]   ;;  %v546_v16 = vld [vmem:[#allocation2 + $0x48] sm:$0xff]   ;;  %v547_v17 = vld [vmem:[#allocation2 + $0x40] sm:$0xff]  }
  0x22   :  { %v110_v41 = vld [vmem:[#allocation4 + $0x100] ss:$0 sm:$0xff]  ;;  %v111_v44 = vld [vmem:[#allocation4 + $0x101] ss:$0 sm:$0xff]  ;;  %v109_v51 = vld [vmem:[#allocation4 + $0xf8] sm:$0xff] }
  0x23   :  { %487 = vmatpush3.bf16.msra.mxu0 %v533_v2  ;;  %v108_v52 = vld [vmem:[#allocation4 + $0xf0] sm:$0xff]  ;;  %v107_v53 = vld [vmem:[#allocation4 + $0xe8] sm:$0xff]  ;;  %v106_v54 = vld [vmem:[#allocation4 + $0xe0] sm:$0xff] }
  0x24   :  { %488 = vmatprep.subr.bf16.mxu0 %v606_v0  ;;  %507 = vmatpush3.bf16.msra.mxu1 %v541_v11  ;;  %v105_v55 = vld [vmem:[#allocation4 + $0xd8] sm:$0xff]  ;;  %v104_v56 = vld [vmem:[#allocation4 + $0xd0] sm:$0xff]  ;;  %v103_v57 = vld [vmem:[#allocation4 + $0xc8] sm:$0xff] }
  0x25   :  { %508 = vmatprep.subr.bf16.mxu1 %v606_v0  ;;  %v102_v58 = vld [vmem:[#allocation4 + $0xc0] sm:$0xff]  ;;  %v101_v59 = vld [vmem:[#allocation4 + $0xb8] sm:$0xff]  ;;  %v100_v60 = vld [vmem:[#allocation4 + $0xb0] sm:$0xff] }
  0x26   :  { %v99_v61 = vld [vmem:[#allocation4 + $0xa8] sm:$0xff]  ;;  %v98_v62 = vld [vmem:[#allocation4 + $0xa0] sm:$0xff]  ;;  %v97_v63 = vld [vmem:[#allocation4 + $0x98] sm:$0xff] }
  0x27   :  { %489 = vmatpush3.bf16.msra.mxu0 %v534_v3  ;;  %v95_v1 = vld [vmem:[#allocation4 + $0x88] sm:$0xff]  ;;  %v94_v2 = vld [vmem:[#allocation4 + $0x80] sm:$0xff]  ;;  %v93_v3 = vld [vmem:[#allocation4 + $0x78] sm:$0xff] }
  0x28   :  { %490 = vmatprep.subr.bf16.mxu0 %v606_v0  ;;  %509 = vmatpush3.bf16.msra.mxu1 %v542_v12  ;;  %v86_v10 = vld [vmem:[#allocation4 + $0x40] sm:$0xff]  ;;  %v85_v11 = vld [vmem:[#allocation4 + $0x38] sm:$0xff]  ;;  %v84_v12 = vld [vmem:[#allocation4 + $0x30] sm:$0xff] }
  0x29   :  { %510 = vmatprep.subr.bf16.mxu1 %v606_v0 }
  0x2b   :  { %491 = vmatpush3.bf16.msra.mxu0 %v535_v4  ;;  %v92_v4 = vld [vmem:[#allocation4 + $0x70] sm:$0xff] }
  0x2c   :  { %492 = vmatprep.subr.bf16.mxu0 %v606_v0  ;;  %511 = vmatpush3.bf16.msra.mxu1 %v543_v13  ;;  %v83_v13 = vld [vmem:[#allocation4 + $0x28] sm:$0xff] }
  0x2d   :  { %512 = vmatprep.subr.bf16.mxu1 %v606_v0 }
  0x2f   :  { %493 = vmatpush3.bf16.msra.mxu0 %v536_v5  ;;  %v91_v5 = vld [vmem:[#allocation4 + $0x68] sm:$0xff] }
  0x30   :  { %494 = vmatprep.subr.bf16.mxu0 %v606_v0  ;;  %513 = vmatpush3.bf16.msra.mxu1 %v544_v14  ;;  %v82_v14 = vld [vmem:[#allocation4 + $0x20] sm:$0xff] }
  0x31   :  { %514 = vmatprep.subr.bf16.mxu1 %v606_v0 }
  0x33   :  { %495 = vmatpush3.bf16.msra.mxu0 %v537_v6  ;;  %v90_v6 = vld [vmem:[#allocation4 + $0x60] sm:$0xff] }
  0x34   :  { %496 = vmatprep.subr.bf16.mxu0 %v606_v0  ;;  %515 = vmatpush3.bf16.msra.mxu1 %v545_v15  ;;  %v81_v15 = vld [vmem:[#allocation4 + $0x18] sm:$0xff] }
  0x35   :  { %516 = vmatprep.subr.bf16.mxu1 %v606_v0 }
  0x37   :  { %497 = vmatpush3.bf16.msra.mxu0 %v538_v7  ;;  %v89_v7 = vld [vmem:[#allocation4 + $0x58] sm:$0xff] }
  0x38   :  { %498 = vmatprep.subr.bf16.mxu0 %v606_v0  ;;  %517 = vmatpush3.bf16.msra.mxu1 %v546_v16  ;;  %v80_v16 = vld [vmem:[#allocation4 + $0x10] sm:$0xff] }
  0x39   :  { %518 = vmatprep.subr.bf16.mxu1 %v606_v0 }
  0x3b   :  { %499 = vmatpush3.bf16.msra.mxu0 %v539_v8  ;;  %v88_v8 = vld [vmem:[#allocation4 + $0x50] sm:$0xff] }
  0x3c   :  { %519 = vmatpush3.bf16.msra.mxu1 %v547_v17  ;;  %357 = vmatprep.subr.mxu0 %v109_v51  ;;  %v79_v17 = vld [vmem:[#allocation4 + $0x8] sm:$0xff]  ;;  %v347_v51 = vlaneseq }
  0x3e   :  { %501 = vmatmul.mubr.bf16.vlgmr.msra.gmra.mxu0 %v116_v9  ;;  %v87_v9 = vld [vmem:[#allocation4 + $0x48] sm:$0xff] }
  0x3f   :  { %421 = vmatprep.mubr.f32.mxu0 %v606_v0  ;;  %358 = vmatpush1.msra.mxu0 %v108_v52  ;;  %v96_v0 = vld [vmem:[#allocation4 + $0x90] sm:$0xff]  ;;  %v348_v52 = vshrl.u32 %v347_v51, 7 }
  0x40   :  { %359 = vmatprep.subr.mxu0 %v107_v53 }
  0x41   :  { %360 = vmatpush1.msra.mxu0 %v106_v54  ;;  %v349_v53 = vsub.s32 0, %v348_v52  ;;  %v115_v54 = vld [vmem:[#allocation4 + $0x120] ss:$8 sm:$0x3] }
  0x42   :  { %361 = vmatprep.subr.mxu0 %v105_v55  ;;  %v353_v55 = vsub.s32 1, %v348_v52 }
  0x43   :  { %362 = vmatpush1.msra.mxu0 %v104_v56  ;;  %v350_v56 = vrot.slane %v115_v54, %v349_v53 }
  0x44   :  { %363 = vmatprep.subr.mxu0 %v103_v57  ;;  %v354_v57 = vrot.slane %v115_v54, %v353_v55 }
  0x45   :  { %364 = vmatpush1.msra.mxu0 %v102_v58 }
  0x46   :  { %365 = vmatprep.subr.mxu0 %v101_v59 }
  0x47   :  { %366 = vmatpush1.msra.mxu0 %v100_v60 }
  0x48   :  { %367 = vmatprep.subr.mxu0 %v99_v61 }
  0x49   :  { %368 = vmatpush1.msra.mxu0 %v98_v62 }
  0x4a   :  { %369 = vmatprep.subr.mxu0 %v97_v63 }
  0x4b   :  { %370 = vmatpush1.msra.mxu0 %v96_v0 }
  0x4c   :  { %371 = vmatprep.subr.mxu0 %v95_v1 }
  0x4d   :  { %372 = vmatpush1.msra.mxu0 %v94_v2 }
  0x4e   :  { %373 = vmatprep.subr.mxu0 %v93_v3 }
  0x4f   :  { %374 = vmatpush1.msra.mxu0 %v92_v4  ;;  %v438_v4 = vld [vmem:[%s657_s3] sm:$0xff] }
  0x50   :  { %375 = vmatprep.subr.mxu0 %v91_v5 }
  0x51   :  { %376 = vmatpush1.msra.mxu0 %v90_v6 }
  0x52   :  { %377 = vmatprep.subr.mxu0 %v89_v7 }
  0x53   :  { %378 = vmatpush1.msra.mxu0 %v88_v8 }
  0x54   :  { %379 = vmatprep.subr.mxu0 %v87_v9 }
  0x55   :  { %380 = vmatpush1.msra.mxu0 %v86_v10 }
  0x56   :  { %381 = vmatprep.subr.mxu0 %v85_v11 }
  0x57   :  { %382 = vmatpush1.msra.mxu0 %v84_v12 }
  0x58   :  { %383 = vmatprep.subr.mxu0 %v83_v13 }
  0x59   :  { %384 = vmatpush1.msra.mxu0 %v82_v14 }
  0x5a   :  { %385 = vmatprep.subr.mxu0 %v81_v15 }
  0x5b   :  { %386 = vmatpush1.msra.mxu0 %v80_v16 }
  0x5c   :  { %387 = vmatprep.subr.mxu0 %v79_v17 }
  0xfe   :  { %v199_v18 = vpop.f32.mrf.mxu0 }
  0xff   :  { %v205_v19 = vrot.slane %v199_v18, 4  ;;  %v212_v20 = vmul.f32 %v199_v18, %v199_v18 }
 0x100   :  { %v502_v21 = vpop.f32.mrf.mxu0 }
 0x101   :  { %v206_v22 = vadd.f32 %v205_v19, %v199_v18  ;;  %v213_v23 = vrot.slane %v212_v20, 4 }
 0x102   :  { %v202_v24 = vpop.f32.mrf.mxu0 }
 0x103   :  { %v207_v25 = vrot.slane %v206_v22, 2  ;;  %v214_v26 = vadd.f32 %v213_v23, %v212_v20 }
 0x104   :  { %v503_v27 = vpop.f32.mrf.mxu0 }
 0x105   :  { %v208_v28 = vadd.f32 %v207_v25, %v206_v22  ;;  %v215_v29 = vrot.slane %v214_v26, 2 }
 0x107   :  { %v209_v30 = vrot.slane %v208_v28, 1  ;;  %v216_v31 = vadd.f32 %v215_v29, %v214_v26 }
 0x109   :  { %v210_v32 = vadd.f32 %v209_v30, %v208_v28  ;;  %v217_v33 = vrot.slane %v216_v31, 1 }
 0x10b   :  { %v211_v34 = vmul.f32 0.125, %v210_v32  ;;  %v218_v35 = vadd.f32 %v217_v33, %v216_v31 }
 0x10d   :  { %v219_v36 = vmul.f32 0.125, %v218_v35  ;;  %v220_v37 = vmul.f32 %v211_v34, %v211_v34 }
 0x10f   :  { %v221_v38 = vsub.f32 %v219_v36, %v220_v37 }
 0x111   :  { %v222_v39 = vmax.f32 %v221_v38, 0.0 }
 0x113   :  { %v223_v40 = vadd.f32 1e-05, %v222_v39 }
 0x115   :  { %548 = vrsqrt.f32 %v223_v40 }
 0x122   :  { %v549_v42 = vpop.eup %548 }
 0x123   :  { %v225_v43 = vmul.f32 %v549_v42, %v110_v41  ;;  %v112_v42 = vld [vmem:[#allocation4 + $0x110] ss:$0 sm:$0xff] }
 0x125   :  { %v226_v45 = vmul.f32 %v225_v43, %v211_v34  ;;  %v228_v46 = vmul.f32 %v225_v43, %v199_v18  ;;  %v78_v18 = vld [vmem:[#allocation4] sm:$0xff] }
 0x126   :  { %388 = vmatpush1.msra.mxu0 %v78_v18 }
 0x127   :  { %v227_v47 = vsub.f32 %v111_v44, %v226_v45  ;;  %v113_v45 = vld [vmem:[#allocation4 + $0x111] ss:$0 sm:$0xff] }
 0x129   :  { %v229_v48 = vadd.f32 %v228_v46, %v227_v47 }
 0x12b   :  { %v230_v49 = vmax.f32 %v229_v48, 0.0 }
 0x12d   :  { %v231_v50 = vpack.c.bf16 %v230_v49, %v230_v49 }
 0x12f   :  { %521 = vmatmul.mubr.bf16.vlgmr.msra.gmra.mxu1 %v231_v50 }
 0x1ef   :  { %v314_v19 = vpop.f32.mrf.mxu1 }
 0x1f0   :  { %v320_v20 = vrot.slane %v314_v19, 4  ;;  %v327_v21 = vmul.f32 %v314_v19, %v314_v19 }
 0x1f1   :  { %v522_v22 = vpop.f32.mrf.mxu1 }
 0x1f2   :  { %v321_v23 = vadd.f32 %v320_v20, %v314_v19  ;;  %v328_v24 = vrot.slane %v327_v21, 4 }
 0x1f3   :  { %v317_v25 = vpop.f32.mrf.mxu1 }
 0x1f4   :  { %v322_v26 = vrot.slane %v321_v23, 2  ;;  %v329_v27 = vadd.f32 %v328_v24, %v327_v21 }
 0x1f5   :  { %v523_v28 = vpop.f32.mrf.mxu1 }
 0x1f6   :  { %v323_v29 = vadd.f32 %v322_v26, %v321_v23  ;;  %v330_v30 = vrot.slane %v329_v27, 2 }
 0x1f8   :  { %v324_v31 = vrot.slane %v323_v29, 1  ;;  %v331_v32 = vadd.f32 %v330_v30, %v329_v27 }
 0x1fa   :  { %v325_v33 = vadd.f32 %v324_v31, %v323_v29  ;;  %v332_v34 = vrot.slane %v331_v32, 1 }
 0x1fc   :  { %v326_v35 = vmul.f32 0.125, %v325_v33  ;;  %v333_v36 = vadd.f32 %v332_v34, %v331_v32 }
 0x1fe   :  { %v334_v37 = vmul.f32 0.125, %v333_v36  ;;  %v335_v38 = vmul.f32 %v326_v35, %v326_v35 }
 0x200   :  { %v336_v39 = vsub.f32 %v334_v37, %v335_v38 }
 0x202   :  { %v337_v40 = vmax.f32 %v336_v39, 0.0 }
 0x204   :  { %v338_v41 = vadd.f32 1e-05, %v337_v40 }
 0x206   :  { %550 = vrsqrt.f32 %v338_v41 }
 0x213   :  { %v551_v43 = vpop.eup %550 }
 0x214   :  { %v340_v44 = vmul.f32 %v551_v43, %v112_v42 }
 0x216   :  { %v341_v46 = vmul.f32 %v340_v44, %v326_v35  ;;  %v343_v48 = vmul.f32 %v340_v44, %v314_v19 }
 0x218   :  { %v342_v47 = vsub.f32 %v113_v45, %v341_v46 }
 0x21a   :  { %v344_v49 = vadd.f32 %v343_v48, %v342_v47 }
 0x21c   :  { %v345_v50 = vmax.f32 %v344_v49, 0.0 }
 0x21e   :  { %422 = vmatmul.mubr.f32.vlgmr.msra.gmra.mxu0 %v345_v50 }
 0x2de   :  { %v423_v58 = vpop.f32.mrf.mxu0 }
 0x2df   :  { %v424_v59 = vadd.f32 %v423_v58, %v350_v56 }
 0x2e0   :  { %v425_v60 = vpop.f32.mrf.mxu0 }
 0x2e1   :  { %442 = vst [vmem:[%s658_s4 + $0x8] sm:$0xff] %v424_v59  ;;  %v426_v61 = vadd.f32 %v425_v60, %v354_v57 }
 0x2e3   :  { %v428_v62 = vmul.f32 1.442695, %v426_v61 }
 0x2e5   :  { %552 = vpow2.f32 %v428_v62 }
 0x2f2   :  { %v553_v63 = vpop.eup %552 }
 0x2f3   :  { %v430_v0 = vadd.f32 1e-05, %v553_v63 }
 0x2f5   :  { %554 = vrsqrt.f32 %v430_v0  ;;  %443 = vst [vmem:[%s658_s4 + $0x10] sm:$0xff] %v430_v0  ;;  %vm433_vm1 = vcmp.eq.f32.partialorder %v430_v0, inf  ;;  %v436_v3 = vand.u32 2147483648, %v430_v0  ;;  %vm435_vm2 = vcmp.eq.f32.partialorder %v430_v0, 0.0 }
 0x302   :  { %v555_v1 = vpop.eup %554 }
 0x303   :  { %v432_v2 = vmul.f32 %v555_v1, %v430_v0 }
 0x305   :  { %v434_v5 = vsel %vm433_vm1, %v430_v0, %v432_v2 }
 0x306   :  { %v437_v6 = vsel %vm435_vm2, %v436_v3, %v434_v5 }
 0x307   :  { %v439_v7 = vmul.f32 %v438_v4, %v437_v6 }
 0x309   :  { %v440_v8 = vadd.f32 %v439_v7, %v424_v59 }
 0x30b   :  { %441 = vst [vmem:[%s658_s4] sm:$0xff] %v440_v8 }
 0x30c   :  { %448 = vsyncpa [#allocation3], 1 }
 0x30d   :  { %449 = vsyncpa [#allocation5], 1 }

</bundles_post_ra>
